<compile_context>
chip_gen: v7x
topology: tpu7x:2x2x1
jax: 0.10.0
libtpu: 0.0.40
codegen_flags: <defaults>
</compile_context>

<pallas_src>
import jax
import jax.numpy as jnp
from jax.experimental import pallas as pl
from jax.experimental.pallas import tpu as pltpu  # noqa: F401  (TPU backend)

B = 2
C_IN, C_OUT, K = 4, 12, 3
L = 100                         # 4 * 100 = 400 = Linear in_features
L_OUT = L - K + 1               # 98
L_PAD = 128                     # lane-dense conv output width (98 -> 128)
CK = C_IN * K                   # 12  (im2col contraction depth)
D_IN, D_OUT = 400, 3


def conv_dense_kernel(xcol_ref, xflat_ref, wc_ref, bc_ref, wd_ref, bd_ref,
                      conv_out_ref, dense_out_ref):
    # xcol_ref:      (CK, B*L_PAD)   im2col activation, zero-padded lanes
    # xflat_ref:     (B, D_IN)       flattened activation for the dense branch
    # wc_ref:        (C_OUT, CK)     conv weight, im2col layout
    # bc_ref:        (C_OUT, 1)      conv bias with alpha folded in
    # wd_ref:        (D_OUT, D_IN)   dense weight, natural row-major layout
    # bd_ref:        (1, D_OUT)      dense bias
    # conv_out_ref:  (C_OUT, B*L_PAD)
    # dense_out_ref: (B, D_OUT)

    # --- Conv1d as a single im2col matmul on the MXU ---
    conv = jnp.dot(wc_ref[...], xcol_ref[...],
                   preferred_element_type=jnp.float32)
    conv_out_ref[...] = conv + bc_ref[...]            # bias(+alpha) broadcast

    # --- Dense: (B, 400) x (3, 400) contracted on the last axes ---
    dense = jax.lax.dot_general(
        xflat_ref[...], wd_ref[...],
        dimension_numbers=(((1,), (1,)), ((), ())),
        preferred_element_type=jnp.float32)
    dense_out_ref[...] = dense + bd_ref[...]


def conv_dense(x, conv_w, conv_b, dense_w, dense_b, alpha=0.0):
    """Returns (conv(x) + alpha, dense(x.reshape(B, -1))) like the torch module."""
    x = x.astype(jnp.float32)

    # --- wrapper glue: im2col with lane padding (L_OUT 98 -> 128) ---
    taps = jnp.stack([x[:, :, k:k + L_OUT] for k in range(K)], axis=2)  # (B,C_IN,K,L_OUT)
    cols = taps.reshape(B, CK, L_OUT)
    cols = jnp.pad(cols, ((0, 0), (0, 0), (0, L_PAD - L_OUT)))
    x_col = jnp.transpose(cols, (1, 0, 2)).reshape(CK, B * L_PAD)       # (12, 256)

    x_flat = x.reshape(B, -1)                                           # (B, 400)
    wc = conv_w.reshape(C_OUT, CK).astype(jnp.float32)                  # (12, 12)
    bc = (conv_b.astype(jnp.float32) + alpha).reshape(C_OUT, 1)         # alpha folded
    wd = dense_w.astype(jnp.float32)                                    # (3, 400)
    bd = dense_b.astype(jnp.float32).reshape(1, D_OUT)                  # (1, 3)

    flops = 2 * C_OUT * CK * B * L_PAD + 2 * B * D_IN * D_OUT
    bytes_accessed = 4 * (x_col.size + x_flat.size + wc.size + bc.size
                          + wd.size + bd.size + C_OUT * B * L_PAD + B * D_OUT)

    conv_flat, dense_out = pl.pallas_call(
        conv_dense_kernel,
        out_shape=(
            jax.ShapeDtypeStruct((C_OUT, B * L_PAD), jnp.float32),
            jax.ShapeDtypeStruct((B, D_OUT), jnp.float32),
        ),
        cost_estimate=pl.CostEstimate(flops=flops, transcendentals=0,
                                      bytes_accessed=bytes_accessed),
    )(x_col, x_flat, wc, bc, wd, bd)

    # --- wrapper glue: unpack padded conv output to (B, C_OUT, L_OUT) ---
    conv_out = jnp.transpose(
        conv_flat.reshape(C_OUT, B, L_PAD), (1, 0, 2))[:, :, :L_OUT]
    return conv_out, dense_out


def _reference(x, conv_w, conv_b, dense_w, dense_b, alpha):
    conv = jax.lax.conv_general_dilated(
        x, conv_w, window_strides=(1,), padding="VALID",
        dimension_numbers=("NCW", "OIW", "NCW"),
    ) + conv_b.reshape(1, -1, 1) + alpha
    dense = x.reshape(x.shape[0], -1) @ dense_w.T + dense_b
    return conv, dense


if __name__ == "__main__":
    key = jax.random.PRNGKey(0)
    kx, kcw, kcb, kdw, kdb = jax.random.split(key, 5)

    x = jax.random.normal(kx, (B, C_IN, L), jnp.float32)
    conv_w = 0.1 * jax.random.normal(kcw, (C_OUT, C_IN, K), jnp.float32)
    conv_b = 0.1 * jax.random.normal(kcb, (C_OUT,), jnp.float32)
    dense_w = 0.05 * jax.random.normal(kdw, (D_OUT, D_IN), jnp.float32)
    dense_b = 0.05 * jax.random.normal(kdb, (D_OUT,), jnp.float32)
    alpha = 0.5

    conv_out, dense_out = conv_dense(x, conv_w, conv_b, dense_w, dense_b, alpha)
    jax.block_until_ready((conv_out, dense_out))

    ref_conv, ref_dense = _reference(x, conv_w, conv_b, dense_w, dense_b, alpha)
    assert conv_out.shape == (B, C_OUT, L_OUT) and dense_out.shape == (B, D_OUT)
    assert jnp.allclose(conv_out, ref_conv, atol=1e-4, rtol=1e-4)
    assert jnp.allclose(dense_out, ref_dense, atol=1e-4, rtol=1e-4)

    print("KERNEL_OK")
</pallas_src>

<mosaic_0001>
module attributes {stable_mosaic.version = 11 : i64} {
  func.func @conv_dense_kernel(%arg0: memref<12x256xf32, #tpu.memory_space<vmem>>, %arg1: memref<2x400xf32, #tpu.memory_space<vmem>>, %arg2: memref<12x12xf32, #tpu.memory_space<vmem>>, %arg3: memref<12x1xf32, #tpu.memory_space<vmem>>, %arg4: memref<3x400xf32, #tpu.memory_space<vmem>>, %arg5: memref<1x3xf32, #tpu.memory_space<vmem>>, %arg6: memref<12x256xf32, #tpu.memory_space<vmem>>, %arg7: memref<2x3xf32, #tpu.memory_space<vmem>>) attributes {dimension_semantics = [], scalar_prefetch = 0 : i64, scratch_operands = 0 : i64, tpu.core_type = #tpu.core_type<tc>} {
    %c0 = arith.constant 0 : index
    %c0_0 = arith.constant 0 : index
    %0 = vector.load %arg2[%c0, %c0_0] : memref<12x12xf32, #tpu.memory_space<vmem>>, vector<12x12xf32>
    %c0_1 = arith.constant 0 : index
    %c0_2 = arith.constant 0 : index
    %1 = vector.load %arg0[%c0_1, %c0_2] : memref<12x256xf32, #tpu.memory_space<vmem>>, vector<12x256xf32>
    %cst = arith.constant dense<0.000000e+00> : vector<12x256xf32>
    %2 = tpu.matmul %0, %1, %cst {dimension_numbers = #tpu.dot_dimension_numbers<[1], [0], [0], [1], [0, 0, 1, 1], [], []>} : vector<12x12xf32>, vector<12x256xf32>, vector<12x256xf32> -> vector<12x256xf32>
    %c0_3 = arith.constant 0 : index
    %c0_4 = arith.constant 0 : index
    %3 = vector.load %arg3[%c0_3, %c0_4] : memref<12x1xf32, #tpu.memory_space<vmem>>, vector<12x1xf32>
    %4 = vector.broadcast %3 : vector<12x1xf32> to vector<12x256xf32>
    %5 = arith.addf %2, %4 : vector<12x256xf32>
    %c0_5 = arith.constant 0 : index
    %c0_6 = arith.constant 0 : index
    %6 = vector.load %arg6[%c0_5, %c0_6] : memref<12x256xf32, #tpu.memory_space<vmem>>, vector<12x256xf32>
    tpu.vector_store %arg6[%c0_5, %c0_6], %5 {strides = array<i32>} : memref<12x256xf32, #tpu.memory_space<vmem>>, vector<12x256xf32>,
    %c0_7 = arith.constant 0 : index
    %c0_8 = arith.constant 0 : index
    %7 = vector.load %arg1[%c0_7, %c0_8] : memref<2x400xf32, #tpu.memory_space<vmem>>, vector<2x400xf32>
    %c0_9 = arith.constant 0 : index
    %c0_10 = arith.constant 0 : index
    %8 = vector.load %arg4[%c0_9, %c0_10] : memref<3x400xf32, #tpu.memory_space<vmem>>, vector<3x400xf32>
    %cst_11 = arith.constant dense<0.000000e+00> : vector<2x3xf32>
    %9 = tpu.matmul %7, %8, %cst_11 {dimension_numbers = #tpu.dot_dimension_numbers<[1], [1], [0], [0], [0, 0, 1, 0], [], []>} : vector<2x400xf32>, vector<3x400xf32>, vector<2x3xf32> -> vector<2x3xf32>
    %c0_12 = arith.constant 0 : index
    %c0_13 = arith.constant 0 : index
    %10 = vector.load %arg5[%c0_12, %c0_13] : memref<1x3xf32, #tpu.memory_space<vmem>>, vector<1x3xf32>
    %11 = vector.broadcast %10 : vector<1x3xf32> to vector<2x3xf32>
    %12 = arith.addf %9, %11 : vector<2x3xf32>
    %c0_14 = arith.constant 0 : index
    %c0_15 = arith.constant 0 : index
    %13 = vector.load %arg7[%c0_14, %c0_15] : memref<2x3xf32, #tpu.memory_space<vmem>>, vector<2x3xf32>
    tpu.vector_store %arg7[%c0_14, %c0_15], %12 {strides = array<i32>} : memref<2x3xf32, #tpu.memory_space<vmem>>, vector<2x3xf32>,
    return
  }
}

</mosaic_0001>

<bundles_post_ra>
// kernel: tpu_custom_call.1
= control target key start
LH: loop header
LB: loop body
LE: loop exit
PB: predicated region body
PF: predicated region fallthrough
CT: control target
= control target key end

     0   :  { %13 = vsyncpa [#allocation3], 0  ;;  %s650_s0 = inlined_call_operand.hbm [shape: f32[12,256], index: 0, kind: input, shape index: {}]   ;;  %s651_s1 = inlined_call_operand.hbm [shape: f32[2,400], index: 1, kind: input, shape index: {}]   ;;  %s652_s2 = inlined_call_operand.vmem [shape: f32[12,12], index: 2, kind: input, shape index: {}]   ;;  %s653_s3 = inlined_call_operand.vmem [shape: f32[12,1], index: 3, kind: input, shape index: {}]   ;;  %s654_s4 = inlined_call_operand.vmem [shape: f32[3,400], index: 4, kind: input, shape index: {}]   ;;  %s655_s5 = inlined_call_operand.vmem [shape: f32[1,3], index: 5, kind: input, shape index: {}]   ;;  %s656_s6 = inlined_call_operand.hbm [shape: f32[12,256], index: 6, kind: output, shape index: {0}]   ;;  %s657_s7 = inlined_call_operand.hbm [shape: f32[2,3], index: 7, kind: output, shape index: {1}]  }
   0x1   :  { %14 = vsyncpa [#allocation6], 0 }
   0x2   :  { %15 = vsyncpa [#allocation4], 0 }
   0x3   :  { %16 = vsyncpa [#allocation9], 0  ;;  %s507_s24 = smov [#allocation2]   ;;  %s411_s28 = scalar_lea.hbm %s650_s0, 512 }
   0x4   :  { %s22_s25 = sshll.u32 %s507_s24, 4  ;;  %p412_p0 = scmp.ne.s32.totalorder %s650_s0, %s411_s28  ;;  %s23_s25 = int_to_ptr.vmem [resolvable:$true] %s22_s25 }
   0x5   :  { %p415_p1 = scmp.lt.u32.totalorder %s411_s28, %s650_s0 }
   0x7   :  { %p417_p2 = pnand %p415_p1, %p412_p0 }
   0x9   :  { %420 = shalt.err (!%p417_p2)
}
   0xa   :  { %s421_s10 = scalar_lea.vmem %s23_s25, 512  ;;  %p426_p4 = scmp.lt.s32.totalorder %s23_s25, %s23_s25 }
   0xb   :  { %p422_p3 = scmp.ne.s32.totalorder %s23_s25, %s421_s10  ;;  %p427_p5 = scmp.lt.s32.totalorder %s421_s10, %s421_s10 }
   0xd   :  { %p428_p6 = por %p427_p5, %p426_p4 }
   0xf   :  { %p429_p7 = pnand %p428_p6, %p422_p3 }
  0x11   :  { %432 = shalt.err (!%p429_p7)
}
  0x12   :  { %s508_s11 = smov 256   ;;  %s509_s12 = smov 16  }
  0x13   :  { %28 = dma.hbm_to_vmem [thread:$0]  %s650_s0, 512, %s23_s25, [#allocation3], %s508_s11, %s508_s11, %s509_s12  }
  0x14   :  { %s510_s15 = smov [#allocation5]   ;;  %s433_s19 = scalar_lea.hbm %s651_s1, 128 }
  0x15   :  { %s35_s16 = sshll.u32 %s510_s15, 4  ;;  %p434_p8 = scmp.ne.s32.totalorder %s651_s1, %s433_s19  ;;  %s36_s16 = int_to_ptr.vmem [resolvable:$true] %s35_s16 }
  0x16   :  { %p437_p9 = scmp.lt.u32.totalorder %s433_s19, %s651_s1 }
  0x18   :  { %p439_p10 = pnand %p437_p9, %p434_p8 }
  0x1a   :  { %442 = shalt.err (!%p439_p10)
}
  0x1b   :  { %s443_s24 = scalar_lea.vmem %s36_s16, 128  ;;  %p448_p12 = scmp.lt.s32.totalorder %s36_s16, %s36_s16 }
  0x1c   :  { %p444_p11 = scmp.ne.s32.totalorder %s36_s16, %s443_s24  ;;  %p449_p13 = scmp.lt.s32.totalorder %s443_s24, %s443_s24 }
  0x1e   :  { %p450_p0 = por %p449_p13, %p448_p12 }
  0x20   :  { %p451_p1 = pnand %p450_p0, %p444_p11 }
  0x22   :  { %454 = shalt.err (!%p451_p1)
}
  0x23   :  { %38 = dma.hbm_to_vmem [thread:$0]  %s651_s1, 128, %s36_s16, [#allocation6]  }
  0x24   :  { %499 = dma.done.wait [#allocation3], 512  }
  0x25   :  { %500 = vsyncadd [#allocation3], 4294966784 }
  0x26   :  { %501 = dma.done.wait [#allocation6], 128  }
  0x27   :  { %502 = vsyncadd [#allocation6], 4294967168  ;;  %v181_v0 = vlaneseq  ;;  %v511_v1 = vmov 0.0   ;;  %v512_v2 = vmov 1983009808   ;;  %v513_v5 = vmov 0  }
  0x28   :  { %149 = vmatprep.mubr.f32.mxu0 %v511_v1  ;;  %v179_v3 = vunpack.c.l.s4 %v512_v2  ;;  %407 = vset.pattern.permute.xlu0 %v513_v5  ;;  %vm78_vm0 = vcmask 1043456   ;;  %vm514_vm1 = vmmov 1   ;;  %v56_v9 = vld [vmem:[#allocation2 + $0x8] sm:$0xff]  ;;  %v58_v10 = vld [vmem:[#allocation2 + $0x18] sm:$0xf]  ;;  %v55_v14 = vld [vmem:[#allocation2] sm:$0xff] }
  0x29   :  { %v182_v4 = vshrl.u32 %v181_v0, 7  ;;  %vm584_vm2 = vmpackc.low %vm78_vm0, %vm514_vm1  ;;  %v167_v11 = vld [vmem:[%s654_s4] sm:$0x77]  ;;  %v388_v12 = vpack.c.bf16 %v58_v10, %v56_v9  ;;  %v57_v15 = vld [vmem:[#allocation2 + $0x10] sm:$0xf]  ;;  %vm202_vm3 = vcmask 130048  }
  0x2a   :  { %v180_v6 = vunpack.c.0.s8 %v179_v3  ;;  %v199_v13 = vcombine.high %v167_v11, %v167_v11  ;;  %v166_v16 = vld [vmem:[#allocation5] sm:$0xff]  ;;  %v391_v17 = vpack.c.bf16 %v57_v15, %v55_v14  ;;  %v168_v20 = vld [vmem:[%s654_s4 + $0x8] sm:$0x77]  ;;  %vm71_vm4 = vcmask 97280   ;;  %s516_s16 = smov [#allocation8]  }
  0x2b   :  { %v177_v18 = vcombine.high %v166_v16, %v166_v16  ;;  %390 = vmatprep.subr.msk.bf16.mxu0 %vm584_vm2, %v388_v12  ;;  %v200_v21 = vcombine.high %v168_v20, %v168_v20  ;;  %v59_v22 = vld [vmem:[%s653_s3] sm:$0xff]  ;;  %v60_v27 = vld [vmem:[%s653_s3 + $0x8] sm:$0xf]  ;;  %s515_s3 = smov [#allocation7]   ;;  %vm347_vm5 = vcmask 17408  }
  0x2c   :  { %v183_v8 = vsub.s32 %v180_v6, %v182_v4  ;;  %207 = vmatprep.subr.mxu1 %v199_v13  ;;  %393 = vmatpush1.bf16.msk.msra.mxu0 %vm584_vm2, %v391_v17  ;;  %v53_v25 = vld [vmem:[%s652_s2] sm:$0xff]  ;;  %v54_v28 = vld [vmem:[%s652_s2 + $0x8] sm:$0xf]  ;;  %s354_s15 = sshll.u32 %s515_s3, 4  ;;  %s367_s2 = sshll.u32 %s516_s16, 4  ;;  %s355_s15 = int_to_ptr.vmem [resolvable:$true] %s354_s15  ;;  %s615_s2 = int_to_ptr.vmem [resolvable:$true] %s367_s2 }
  0x2d   :  { %208 = vmatpush1.xpose.msra.mxu1 %v167_v11  ;;  %63 = vperm.xlu0 %407, %v59_v22   ;;  %v385_v39 = vld [vmem:[%s655_s5] ss:$0 sm:$0xff]  ;;  %s455_s19 = scalar_lea.vmem %s355_s15, 512  ;;  %p460_p3 = scmp.lt.s32.totalorder %s355_s15, %s355_s15 }
  0x2e   :  { %v184_v19 = vrot.slane %v166_v16, %v183_v8  ;;  %v191_v23 = vrot.slane %v177_v18, %v183_v8  ;;  %386 = vmatprep.subr.msk.mxu1 %vm202_vm3, %v200_v21  ;;  %p456_p2 = scmp.ne.s32.totalorder %s355_s15, %s455_s19  ;;  %p461_p4 = scmp.lt.s32.totalorder %s455_s19, %s455_s19 }
  0x2f   :  { %383 = vmatmul.mubr.msk.f32.vlgmr.msra.gmra.mrb[0].mxu0 %vm71_vm4, %v53_v25 }
  0x30   :  { %v192_v24 = vcombine.high %v184_v19, %v184_v19  ;;  %v193_v26 = vcombine.high %v191_v23, %v191_v23  ;;  %155 = vmatprep.mubr.f32.mxu0 %v511_v1  ;;  %p462_p5 = por %p461_p4, %p460_p3 }
  0x31   :  { %68 = vperm.xlu0 %407, %v60_v27  }
  0x32   :  { %271 = vmatprep.mubr.f32.mxu1 %v192_v24  ;;  %p463_p6 = pnand %p462_p5, %p456_p2 }
  0x33   :  { %272 = vmatmul.mubr.f32.vlgmr.msra.gmra.mrb[0].mxu1 %v184_v19  ;;  %384 = vmatmul.mubr.msk.f32.gmra.mrb[2].mxu0 %vm71_vm4, %v54_v28 }
  0x34   :  { %278 = vmatpush1.xpose.msra.mxu1 %v168_v20  ;;  %387 = vmatprep.mubr.msk.f32.mxu1 %vm202_vm3, %v193_v26 }
  0x3b   :  { %342 = vmatmul.mubr.f32.vlgmr.msra.gmra.mrb[0].mxu1 %v191_v23 }
  0xac   :  { %v64_v29 = vpop.permute.xlu0 %63 }
  0xb0   :  { %v69_v34 = vpop.permute.xlu0 %68 }
 0x102   :  { %v151_v30 = vpop.f32.mrb[0].mxu0 }
 0x103   :  { %v152_v31 = vadd.f32 %v151_v30, %v64_v29  ;;  %v153_v32 = vpop.f32.mrb[1].mxu0 }
 0x104   :  { %v154_v33 = vadd.f32 %v153_v32, %v64_v29 }
 0x105   :  { %162 = vst [vmem:[#allocation7] sm:$0xff] %v152_v31 }
 0x106   :  { %163 = vst [vmem:[#allocation7 + $0x8] sm:$0xff] %v154_v33  ;;  %v157_v35 = vpop.f32.mrb[2].mxu0 }
 0x107   :  { %v158_v36 = vadd.f32 %v157_v35, %v69_v34  ;;  %v159_v37 = vpop.f32.mrb[3].mxu0 }
 0x108   :  { %v160_v38 = vadd.f32 %v159_v37, %v69_v34 }
 0x109   :  { %164 = vst [vmem:[#allocation7 + $0x10] sm:$0xf] %v158_v36 }
 0x10a   :  { %165 = vst [vmem:[#allocation7 + $0x18] sm:$0xf] %v160_v38 }
 0x10e   :  { %v343_v40 = vpop.f32.mrb[0].mxu1 }
 0x10f   :  { %v394_v41 = vadd.f32 %v385_v39, %v343_v40  ;;  %v345_v42 = vpop.f32.mrb[1].mxu1 }
 0x110   :  { %466 = shalt.err (!%p463_p6)
}
 0x111   :  { %s467_s5 = scalar_lea.hbm %s656_s6, 512 }
 0x112   :  { %p468_p7 = scmp.ne.s32.totalorder %s656_s6, %s467_s5  ;;  %p471_p8 = scmp.lt.u32.totalorder %s467_s5, %s656_s6 }
 0x114   :  { %p473_p9 = pnand %p471_p8, %p468_p7 }
 0x116   :  { %476 = shalt.err (!%p473_p9)
}
 0x117   :  { %360 = dma.vmem_to_hbm [thread:$0]  %s355_s15, 512, %s656_s6, [#allocation4], %s508_s11, %s508_s11, %s509_s12   ;;  %348 = vst.msk [vmem:[#allocation8] sm:$0x3] %vm347_vm5, %v394_v41 }
 0x118   :  { %s477_s26 = scalar_lea.vmem %s615_s2, 32  ;;  %p482_p11 = scmp.lt.s32.totalorder %s615_s2, %s615_s2 }
 0x119   :  { %p478_p10 = scmp.ne.s32.totalorder %s615_s2, %s477_s26  ;;  %p483_p12 = scmp.lt.s32.totalorder %s477_s26, %s477_s26 }
 0x11b   :  { %p484_p13 = por %p483_p12, %p482_p11 }
 0x11d   :  { %p485_p0 = pnand %p484_p13, %p478_p10 }
 0x11f   :  { %488 = shalt.err (!%p485_p0)
}
 0x120   :  { %s489_s29 = scalar_lea.hbm %s657_s7, 32 }
 0x121   :  { %p490_p1 = scmp.ne.s32.totalorder %s657_s7, %s489_s29  ;;  %p493_p2 = scmp.lt.u32.totalorder %s489_s29, %s657_s7 }
 0x123   :  { %p495_p3 = pnand %p493_p2, %p490_p1 }
 0x125   :  { %498 = shalt.err (!%p495_p3)
}
 0x126   :  { %370 = dma.vmem_to_hbm [thread:$0]  %s615_s2, 32, %s657_s7, [#allocation9]  }
 0x127   :  { %503 = dma.done.wait [#allocation4], 512  }
 0x128   :  { %504 = vsyncadd [#allocation4], 4294966784 }
 0x129   :  { %505 = dma.done.wait [#allocation9], 32  }
 0x12a   :  { %506 = vsyncadd [#allocation9], 4294967264 }
 0x12b   :  { %377 = vsyncpa [#allocation3], 1 }
 0x12c   :  { %378 = vsyncpa [#allocation6], 1 }
 0x12d   :  { %379 = vsyncpa [#allocation4], 1 }
 0x12e   :  { %380 = vsyncpa [#allocation9], 1 }

</bundles_post_ra>
